<compile_context>
chip_gen: v5e
topology: v5e:2x2
jax: 0.10.0
libtpu: 0.0.40
codegen_flags: <defaults>
</compile_context>

<pallas_src>
import functools

import jax
import jax.numpy as jnp
from jax.experimental import pallas as pl
from jax.experimental.pallas import tpu as pltpu


def _round_up(v, m):
    return ((v + m - 1) // m) * m


def _mlp_kernel(x_ref, w1_ref, b1_ref, w2_ref, b2_ref, o_ref):
    # x tile: (block_rows, D) in the caller's dtype; cast to bf16 for the MXU here
    # (no extra wrapper-side HBM pass over x).
    xb = x_ref[...].astype(jnp.bfloat16)
    # Transposed formulation so rows land on lanes:
    #   hT[h, r] = sum_d w1[h, d] * x[r, d]   -> (H, block_rows), f32 accumulation.
    # Dimension numbers (((1,),(1,)),((),())) are the standard NT matmul pattern.
    hT = jax.lax.dot_general(
        w1_ref[...], xb,
        dimension_numbers=(((1,), (1,)), ((), ())),
        preferred_element_type=jnp.float32)
    # Lane-dense epilogue (H on sublanes, rows on lanes): bias + ReLU on the VPU, f32.
    hT = jnp.maximum(hT + b1_ref[...], 0.0)
    # fc2 (single output unit): VPU multiply by the w2 column + cheap sublane reduce.
    o = jnp.sum(hT * w2_ref[...], axis=0, keepdims=True)        # (1, block_rows)
    # Lane-dense store: one (1, 1, block_rows) slab per grid step (no masked
    # single-lane stores).
    o_ref[...] = (o + b2_ref[0])[None].astype(o_ref.dtype)


@functools.partial(jax.jit, static_argnames=("block_rows",))
def relation_network_fine_2fc(x, w1, b1, w2, b2, *, block_rows=8192):
    """x: [N, D]; w1: [D, H]; b1: [1, H]; w2: [H, 1]; b2: [1, 1] -> [N, 1]."""
    n, d = x.shape
    hdim = w1.shape[1]
    assert block_rows % 128 == 0, "block_rows must be a multiple of 128"

    # Row-tile selection: as large as possible to amortize the ~0.35us/step grid
    # overhead, but clamped so there are >=2 (target >=4) grid steps feeding both
    # of v7x's TensorCores through the "parallel" grid axis.
    bs = min(block_rows, _round_up(max(-(-n // 4), 1), 128))
    bs = max(bs, 128)
    num_blocks = -(-n // bs)          # cdiv; last block may be ragged

    # Tiny grid-invariant operands (one-time conversion cost is negligible).
    w1_hd = w1.T.astype(jnp.bfloat16)                 # (H, D) PyTorch weight layout
    b1_col = b1.reshape(hdim, 1).astype(jnp.float32)  # (H, 1) column
    w2_col = w2.reshape(hdim, 1).astype(jnp.float32)  # (H, 1) column
    b2_s = b2.reshape(1).astype(jnp.float32)          # SMEM scalar

    out_itemsize = jnp.dtype(x.dtype).itemsize
    cost = pl.CostEstimate(
        flops=2 * n * d * hdim + 3 * n * hdim,
        transcendentals=0,
        bytes_accessed=(n * d * jnp.dtype(x.dtype).itemsize   # x streamed once
                        + d * hdim * 2                        # w1 (bf16)
                        + 2 * hdim * 4 + 4                    # b1, w2, b2 (f32)
                        + num_blocks * bs * out_itemsize),    # output
    )

    out = pl.pallas_call(
        _mlp_kernel,
        # (num_blocks, 1, block_rows): rows live on lanes -> unmasked lane-dense
        # stores; wrapper flattens back to (N, 1) afterwards.
        out_shape=jax.ShapeDtypeStruct((num_blocks, 1, bs), x.dtype),
        grid_spec=pltpu.PrefetchScalarGridSpec(
            num_scalar_prefetch=0,
            grid=(num_blocks,),
            in_specs=[
                # x tile; N need not divide bs — the ragged last block reads
                # unspecified rows that out[:n] discards (rows are independent).
                # TODO(synk): if ever vload/MXU-feed bound, fold 4 rows into lanes
                # (x viewed as [N/4, 128] with kron(I4, w1) as the stationary RHS).
                pl.BlockSpec((bs, d), lambda i: (i, 0)),
                # Grid-invariant weights/biases, resident in VMEM.
                # TODO(synk): for production-sized D/H add pipeline_mode=pl.Buffered(1)
                # and tile w1 over H via an extra "arbitrary" grid axis (v7x VMEM).
                pl.BlockSpec((hdim, d), lambda i: (0, 0)),          # w1 (H, D) bf16
                pl.BlockSpec((hdim, 1), lambda i: (0, 0)),          # b1 column
                pl.BlockSpec((hdim, 1), lambda i: (0, 0)),          # w2 column
                pl.BlockSpec(memory_space=pltpu.MemorySpace.SMEM),  # b2 scalar
            ],
            out_specs=pl.BlockSpec((1, 1, bs), lambda i: (i, 0, 0)),
        ),
        compiler_params=pltpu.CompilerParams(
            dimension_semantics=("parallel",)),   # >=2 steps shard across v7x's 2 TCs
        cost_estimate=cost,
    )(x, w1_hd, b1_col, w2_col, b2_s)

    return out.reshape(num_blocks * bs, 1)[:n]


if __name__ == "__main__":
    # Small synthetic shapes consistent with the module's forward: x: [N, input_size].
    # N is deliberately not a multiple of the row tile to exercise the ragged path.
    N, INPUT_SIZE, HIDDEN_SIZE = 200, 32, 64

    key = jax.random.PRNGKey(0)
    kx, kw1, kb1, kw2, kb2 = jax.random.split(key, 5)

    x = jax.random.normal(kx, (N, INPUT_SIZE), dtype=jnp.float32)

    # nn.Linear parameters (W [out, in], b [out]) stored transposed as [in, out].
    w1 = jax.random.normal(kw1, (INPUT_SIZE, HIDDEN_SIZE), dtype=jnp.float32) * 0.1
    b1 = jax.random.normal(kb1, (1, HIDDEN_SIZE), dtype=jnp.float32) * 0.1
    w2 = jax.random.normal(kw2, (HIDDEN_SIZE, 1), dtype=jnp.float32) * 0.1
    b2 = jax.random.normal(kb2, (1, 1), dtype=jnp.float32) * 0.1

    out = relation_network_fine_2fc(x, w1, b1, w2, b2)
    out = jax.block_until_ready(out)

    # Pure-JAX reference mimicking the kernel's bf16 MXU inputs (f32 accumulate,
    # fc2 done elementwise in f32 to avoid XLA matmul precision ambiguity).
    xb = x.astype(jnp.bfloat16).astype(jnp.float32)
    w1b = w1.astype(jnp.bfloat16).astype(jnp.float32)
    h_ref = jnp.maximum(xb @ w1b + b1, 0.0)
    ref = jnp.sum(h_ref * w2.reshape(1, -1), axis=1, keepdims=True) + b2

    assert out.shape == (N, 1)
    assert jnp.allclose(out, ref, atol=1e-4, rtol=1e-4)

    # Sanity check vs. full-f32 module semantics (looser tolerance for bf16 inputs).
    ref_f32 = jnp.maximum(x @ w1 + b1, 0.0) @ w2 + b2
    assert jnp.allclose(out, ref_f32, atol=3e-2, rtol=3e-2)

    print("KERNEL_OK")
</pallas_src>

<mosaic_0001>
module attributes {stable_mosaic.version = 11 : i64} {
  func.func @_mlp_kernel(%arg0: i32, %arg1: memref<128x32xf32, #tpu.memory_space<vmem>>, %arg2: memref<64x32xbf16, #tpu.memory_space<vmem>>, %arg3: memref<64x1xf32, #tpu.memory_space<vmem>>, %arg4: memref<64x1xf32, #tpu.memory_space<vmem>>, %arg5: memref<1xf32, #tpu.memory_space<smem>>, %arg6: memref<1x1x128xf32, #tpu.memory_space<vmem>>) attributes {dimension_semantics = [#tpu.dimension_semantics<parallel>], iteration_bounds = array<i64: 2>, scalar_prefetch = 0 : i64, scratch_operands = 0 : i64, tpu.core_type = #tpu.core_type<tc>, window_params = [{transform_indices = @transform_0, window_bounds = array<i64: 128, 32>}, {pipeline_mode = #tpu.pipeline_mode<synchronous>, transform_indices = @transform_1, window_bounds = array<i64: 64, 32>}, {pipeline_mode = #tpu.pipeline_mode<synchronous>, transform_indices = @transform_2, window_bounds = array<i64: 64, 1>}, {pipeline_mode = #tpu.pipeline_mode<synchronous>, transform_indices = @transform_3, window_bounds = array<i64: 64, 1>}, {transform_indices = @transform_4, window_bounds = array<i64: 1>}, {transform_indices = @transform_5, window_bounds = array<i64: 1, 1, 128>}]} {
    %c0 = arith.constant 0 : index
    %c0_0 = arith.constant 0 : index
    %0 = vector.load %arg1[%c0, %c0_0] : memref<128x32xf32, #tpu.memory_space<vmem>>, vector<128x32xf32>
    %1 = arith.truncf %0 : vector<128x32xf32> to vector<128x32xbf16>
    %c0_1 = arith.constant 0 : index
    %c0_2 = arith.constant 0 : index
    %2 = vector.load %arg2[%c0_1, %c0_2] : memref<64x32xbf16, #tpu.memory_space<vmem>>, vector<64x32xbf16>
    %cst = arith.constant dense<0.000000e+00> : vector<64x128xf32>
    %3 = tpu.matmul %2, %1, %cst {dimension_numbers = #tpu.dot_dimension_numbers<[1], [1], [0], [0], [0, 0, 1, 0], [], []>} : vector<64x32xbf16>, vector<128x32xbf16>, vector<64x128xf32> -> vector<64x128xf32>
    %c0_3 = arith.constant 0 : index
    %c0_4 = arith.constant 0 : index
    %4 = vector.load %arg3[%c0_3, %c0_4] : memref<64x1xf32, #tpu.memory_space<vmem>>, vector<64x1xf32>
    %5 = vector.broadcast %4 : vector<64x1xf32> to vector<64x128xf32>
    %6 = arith.addf %3, %5 : vector<64x128xf32>
    %cst_5 = arith.constant 0.000000e+00 : f32
    %7 = vector.broadcast %cst_5 : f32 to vector<64x128xf32>
    %8 = arith.maximumf %6, %7 : vector<64x128xf32>
    %c0_6 = arith.constant 0 : index
    %c0_7 = arith.constant 0 : index
    %9 = vector.load %arg4[%c0_6, %c0_7] : memref<64x1xf32, #tpu.memory_space<vmem>>, vector<64x1xf32>
    %10 = vector.broadcast %9 : vector<64x1xf32> to vector<64x128xf32>
    %11 = arith.mulf %8, %10 : vector<64x128xf32>
    %cst_8 = arith.constant dense<0.000000e+00> : vector<128xf32>
    %12 = vector.multi_reduction <add>, %11, %cst_8 [0] : vector<64x128xf32> to vector<128xf32>
    %13 = vector.shape_cast %12 : vector<128xf32> to vector<1x128xf32>
    %c0_9 = arith.constant 0 : index
    %14 = memref.load %arg5[%c0_9] : memref<1xf32, #tpu.memory_space<smem>>
    %15 = vector.broadcast %14 : f32 to vector<1x128xf32>
    %16 = arith.addf %13, %15 : vector<1x128xf32>
    %17 = vector.shape_cast %16 : vector<1x128xf32> to vector<1x1x128xf32>
    %c0_10 = arith.constant 0 : index
    %c0_11 = arith.constant 0 : index
    %c0_12 = arith.constant 0 : index
    %18 = vector.load %arg6[%c0_10, %c0_11, %c0_12] : memref<1x1x128xf32, #tpu.memory_space<vmem>>, vector<1x1x128xf32>
    tpu.vector_store %arg6[%c0_10, %c0_11, %c0_12], %17 {strides = array<i32>} : memref<1x1x128xf32, #tpu.memory_space<vmem>>, vector<1x1x128xf32>,
    return
  }
  func.func @transform_0(%arg0: i32) -> (i32, i32) {
    %c0_i32 = arith.constant 0 : i32
    %c0_i32_0 = arith.constant 0 : i32
    return %arg0, %c0_i32 : i32, i32
  }
  func.func @transform_1(%arg0: i32) -> (i32, i32) {
    %c0_i32 = arith.constant 0 : i32
    %c0_i32_0 = arith.constant 0 : i32
    %c0_i32_1 = arith.constant 0 : i32
    return %c0_i32, %c0_i32_0 : i32, i32
  }
  func.func @transform_2(%arg0: i32) -> (i32, i32) {
    %c0_i32 = arith.constant 0 : i32
    %c0_i32_0 = arith.constant 0 : i32
    %c0_i32_1 = arith.constant 0 : i32
    return %c0_i32, %c0_i32_0 : i32, i32
  }
  func.func @transform_3(%arg0: i32) -> (i32, i32) {
    %c0_i32 = arith.constant 0 : i32
    %c0_i32_0 = arith.constant 0 : i32
    %c0_i32_1 = arith.constant 0 : i32
    return %c0_i32, %c0_i32_0 : i32, i32
  }
  func.func @transform_4(%arg0: i32) -> i32 {
    %c0_i32 = arith.constant 0 : i32
    %c0_i32_0 = arith.constant 0 : i32
    return %c0_i32 : i32
  }
  func.func @transform_5(%arg0: i32) -> (i32, i32, i32) {
    %c0_i32 = arith.constant 0 : i32
    %c0_i32_0 = arith.constant 0 : i32
    %c0_i32_1 = arith.constant 0 : i32
    return %arg0, %c0_i32, %c0_i32_0 : i32, i32, i32
  }
}

</mosaic_0001>

<bundles_post_ra>
// kernel: relation_network_fine_2fc.1
= control target key start
LH: loop header
LB: loop body
LE: loop exit
PB: predicated region body
PF: predicated region fallthrough
CT: control target
= control target key end

     0   :  { %s931_s0 = inlined_call_operand.vmem [shape: f32[200,32], index: 0, kind: input, shape index: {}]   ;;  %s932_s1 = inlined_call_operand.vmem [shape: bf16[64,32], index: 1, kind: input, shape index: {}]   ;;  %s933_s2 = inlined_call_operand.vmem [shape: f32[64,1], index: 2, kind: input, shape index: {}]   ;;  %s934_s3 = inlined_call_operand.vmem [shape: f32[64,1], index: 3, kind: input, shape index: {}]   ;;  %s935_s4 = inlined_call_operand.<no memory space> [shape: f32[1], index: 4, kind: input, shape index: {}]   ;;  %s936_s5 = inlined_call_operand.hbm [shape: f32[2,1,128], index: 5, kind: output, shape index: {}]  }
   0x1   :  { %10 = sst [smem:[#allocation2]] %s935_s4 }
   0x2   :  { %11 = vsyncpa [#allocation4], 0 }
   0x3   :  { %13 = vsyncpa [#allocation4 + $0x1], 0  ;;  %s757_s20 = smov 0   ;;  %s759_s21 = smov 0  }
   0x4   :  { %s761_s22 = smov 0   ;;  %s763_s23 = smov 0  }
   0x5 LB: > { %s778_s4 = sadd.s32 4294967295, %s721_s23   ;;  %s560_s24 = sadd.s32 4294967294, %s721_s23   ;;  %s721_s23 = sphi %s763_s23, %s942_s23   ;;  %s717_s22 = sphi %s761_s22, %s941_s22   ;;  %s713_s21 = sphi %s759_s21, %s940_s21   ;;  %s709_s20 = sphi %s757_s20, %s939_s20  }
   0x6   : > { %s782_s25 = sadd.s32 1, %s721_s23   ;;  %s136_s26 = sadd.s32 1, %s717_s22 }
   0x7   : > { %s133_s27 = ssub.s32 %s721_s23, %s782_s25  ;;  %p146_p0 = scmp.ne.s32.totalorder %s717_s22, %s713_s21 }
   0x8   : > { %p134_p1 = scmp.eq.s32.totalorder %s133_s27, 0  ;;  %p147_p2 = scmp.eq.s32.totalorder %s778_s4, 1 }
   0x9   : > { %p152_p3 = scmp.ne.s32.totalorder %s713_s21, %s709_s20  ;;  %p153_p4 = scmp.eq.s32.totalorder %s560_s24, 1 }
   0xa   : > { %s793_s28 = scalar_select %p134_p1, %s717_s22, %s136_s26  }
   0xb   : > { %p795_p5 = por %p147_p2, %p146_p0  ;;  %p799_p6 = por %p153_p4, %p152_p3 }
   0xc   : > { %p563_p7 = scmp.ge.s32.totalorder %s721_s23, 1  ;;  %p200_p8 = scmp.lt.s32.totalorder %s721_s23, 3 }
   0xe   : > { %p201_p9 = pnand %p563_p7, %p200_p8 }
   0xf   : > { %s564_s6 = sshll.u32 (!%p201_p9), %s778_s4, 4  ;;  %s488_s18 = sld [smem:[#allocation2]] (!%p201_p9) }
  0x10   : > { %204 = sbr.rel (%p201_p9) target bundleno = 262 (0x106), region = 40  ;;  %p236_p10 = scmp.lt.s32.totalorder (!%p201_p9), %s564_s6, 24 }
  0x11   : > { %s229_s19 = sand.u32 (!%p201_p9), 1, %s713_s21   ;;  %s501_s27 = scalar_lea.hbm (!%p201_p9), %s936_s5, %s778_s4 }
  0x12   : > { %s505_s8 = sshll.u32 (!%p201_p9), %s501_s27, 4  ;;  %s493_s9 = scalar_lea.sflag (!%p201_p9), [#allocation4], %s229_s19  ;;  %s506_s8 = int_to_ptr.hbm [resolvable:$true] %s505_s8 }
  0x13   : > { %s679_s12 = scalar_lea.hbm (!%p201_p9), %s936_s5, 2 }
  0x15   : > { %v277_v0 = vld [vmem:[%s933_s2] sm:$0xff]  ;;  %v723_v1 = vmov 0   ;;  %s944_s6 = smov (!%p236_p10, %s564_s6), 24  ;;  %v279_v2 = vld [vmem:[%s933_s2 + $0x10] sm:$0xff]  ;;  %vm345_vm0 = vcmask 261120   ;;  %v278_v5 = vld [vmem:[%s933_s2 + $0x8] sm:$0xff] }
  0x16   : > { %656 = vset.pattern.permute.xlu0 %v723_v1  ;;  %657 = vset.pattern.permute.xlu1 %v723_v1  ;;  %s565_s11 = sshll.u32 %s944_s6, 3  ;;  %v280_v11 = vld [vmem:[%s933_s2 + $0x18] sm:$0xff]  ;;  %v420_v12 = vld [vmem:[%s934_s3 + $0x8] sm:$0xff]  ;;  %v421_v17 = vld [vmem:[%s934_s3 + $0x10] sm:$0xff]  ;;  %s230_s6 = scalar_lea.vmem [#allocation3], %s229_s19 }
  0x17   : > { %287 = vperm.xlu0 %656, %v277_v0   ;;  %658 = vset.pattern.permute.xlu2 %v723_v1  ;;  %s815_s14 = scalar_lea.vmem %s931_s0, %s565_s11  ;;  %v422_v18 = vld [vmem:[%s934_s3 + $0x18] sm:$0xff]  ;;  %v283_v23 = vld [vmem:[%s933_s2 + $0x30] sm:$0xff]  ;;  %v281_v24 = vld [vmem:[%s933_s2 + $0x20] sm:$0xff]  ;;  %s503_s7 = sshll.u32 %s230_s6, 4  ;;  %s504_s7 = int_to_ptr.vmem [resolvable:$true] %s503_s7 }
  0x18   : > { %297 = vperm.xlu1 %657, %v279_v2   ;;  %v259_v3 = vld [vmem:[%s815_s14 + $0x70] sm:$0xff]  ;;  %v260_v4 = vld [vmem:[%s815_s14 + $0x78] sm:$0xff]  ;;  %v257_v7 = vld [vmem:[%s815_s14 + $0x60] sm:$0xff]  ;;  %307 = vperm.xlu2 %658, %v281_v24  }
  0x19   : > { %v268_v6 = vpack.c.bf16 %v260_v4, %v259_v3  ;;  %v258_v8 = vld [vmem:[%s815_s14 + $0x68] sm:$0xff]  ;;  %v255_v14 = vld [vmem:[%s815_s14 + $0x50] sm:$0xff]  ;;  %v256_v15 = vld [vmem:[%s815_s14 + $0x58] sm:$0xff] }
  0x1a   : > { %v267_v10 = vpack.c.bf16 %v258_v8, %v257_v7  ;;  %v266_v16 = vpack.c.bf16 %v256_v15, %v255_v14  ;;  %v253_v20 = vld [vmem:[%s815_s14 + $0x40] sm:$0xff]  ;;  %v254_v21 = vld [vmem:[%s815_s14 + $0x48] sm:$0xff]  ;;  %v284_v25 = vld [vmem:[%s933_s2 + $0x38] sm:$0xff] }
  0x1b   : > { %v380_v9 = vsel %vm345_vm0, %v268_v6, 0  ;;  %v265_v22 = vpack.c.bf16 %v254_v21, %v253_v20  ;;  %v251_v27 = vld [vmem:[%s815_s14 + $0x30] sm:$0xff]  ;;  %v252_v28 = vld [vmem:[%s815_s14 + $0x38] sm:$0xff]  ;;  %v424_v30 = vld [vmem:[%s934_s3 + $0x28] sm:$0xff] }
  0x1c   : > { %382 = vmatpush.bf16.xpose.msra.mxu0 %v380_v9  ;;  %592 = vmatpush.bf16.xpose.msra.mxu1 %v380_v9  ;;  %v377_v13 = vsel %vm345_vm0, %v267_v10, 0  ;;  %v374_v19 = vsel %vm345_vm0, %v266_v16, 0  ;;  %v264_v29 = vpack.c.bf16 %v252_v28, %v251_v27  ;;  %v426_v31 = vld [vmem:[%s934_s3 + $0x38] sm:$0xff]  ;;  %v249_v33 = vld [vmem:[%s815_s14 + $0x20] sm:$0xff]  ;;  %v250_v34 = vld [vmem:[%s815_s14 + $0x28] sm:$0xff] }
  0x1d   : > { %593 = vmatpush.bf16.xpose.msra.mxu2 %v380_v9  ;;  %594 = vmatpush.bf16.xpose.msra.mxu3 %v380_v9  ;;  %v371_v26 = vsel %vm345_vm0, %v265_v22, 0  ;;  %v419_v35 = vld [vmem:[%s934_s3] sm:$0xff]  ;;  %v263_v36 = vpack.c.bf16 %v250_v34, %v249_v33  ;;  %v247_v38 = vld [vmem:[%s815_s14 + $0x10] sm:$0xff]  ;;  %v248_v39 = vld [vmem:[%s815_s14 + $0x18] sm:$0xff] }
  0x1e   : > { %v368_v32 = vsel %vm345_vm0, %v264_v29, 0  ;;  %v282_v40 = vld [vmem:[%s933_s2 + $0x28] sm:$0xff]  ;;  %v262_v41 = vpack.c.bf16 %v248_v39, %v247_v38  ;;  %v245_v43 = vld [vmem:[%s815_s14] sm:$0xff]  ;;  %v425_v48 = vld [vmem:[%s934_s3 + $0x30] sm:$0xff] }
  0x1f   : > { %292 = vperm.xlu0 %656, %v278_v5   ;;  %v365_v37 = vsel %vm345_vm0, %v263_v36, 0  ;;  %v246_v44 = vld [vmem:[%s815_s14 + $0x8] sm:$0xff]  ;;  %v423_v45 = vld [vmem:[%s934_s3 + $0x20] sm:$0xff]  ;;  %v590_v51 = vld [vmem:[%s932_s1 + $0x10] sm:$0xff]  ;;  %s673_s14 = sshra.s32 %s506_s8, 4  ;;  %s674_s14 = int_to_ptr.hbm [resolvable:$true] %s673_s14 }
  0x20   : > { %302 = vperm.xlu1 %657, %v280_v11   ;;  %429 = vperm.xlu2 %658, %v419_v35   ;;  %v362_v42 = vsel %vm345_vm0, %v262_v41, 0  ;;  %v261_v46 = vpack.c.bf16 %v246_v44, %v245_v43  ;;  %v588_v49 = vld [vmem:[%s932_s1] sm:$0xff]  ;;  %v589_v50 = vld [vmem:[%s932_s1 + $0x8] sm:$0xff]  ;;  %v591_v52 = vld [vmem:[%s932_s1 + $0x18] sm:$0xff]  ;;  %s675_s10 = scalar_lea.hbm %s674_s14, 1  ;;  %p680_p0 = scmp.lt.s32.totalorder %s674_s14, %s936_s5 }
  0x21   : > { %p676_p11 = scmp.ne.s32.totalorder %s674_s14, %s675_s10  ;;  %p681_p1 = scmp.lt.s32.totalorder %s679_s12, %s675_s10 }
  0x22   : > { %v359_v47 = vsel %vm345_vm0, %v261_v46, 0 }
  0x23   : > { %p677_p12 = pnand %p676_p11, %p795_p5  ;;  %p682_p2 = por %p681_p1, %p680_p0 }
  0x24   : > { %383 = vmatpush.bf16.xpose.msra.mxu0 %v377_v13  ;;  %595 = vmatpush.bf16.xpose.msra.mxu1 %v377_v13 }
  0x25   : > { %596 = vmatpush.bf16.xpose.msra.mxu2 %v377_v13  ;;  %597 = vmatpush.bf16.xpose.msra.mxu3 %v377_v13  ;;  %p678_p13 = pneg %p677_p12 }
  0x27   : > { %434 = vperm.xlu0 %656, %v420_v12   ;;  %p683_p3 = pnand %p682_p2, %p678_p13 }
  0x28   : > { %439 = vperm.xlu1 %657, %v421_v17   ;;  %312 = vperm.xlu2 %658, %v282_v40  }
  0x2c   : > { %384 = vmatpush.bf16.xpose.msra.mxu0 %v374_v19  ;;  %598 = vmatpush.bf16.xpose.msra.mxu1 %v374_v19 }
  0x2d   : > { %599 = vmatpush.bf16.xpose.msra.mxu2 %v374_v19  ;;  %600 = vmatpush.bf16.xpose.msra.mxu3 %v374_v19 }
  0x2f   : > { %444 = vperm.xlu0 %656, %v422_v18  }
  0x30   : > { %317 = vperm.xlu1 %657, %v283_v23   ;;  %449 = vperm.xlu2 %658, %v423_v45  }
  0x34   : > { %385 = vmatpush.bf16.xpose.msra.mxu0 %v371_v26  ;;  %601 = vmatpush.bf16.xpose.msra.mxu1 %v371_v26 }
  0x35   : > { %602 = vmatpush.bf16.xpose.msra.mxu2 %v371_v26  ;;  %603 = vmatpush.bf16.xpose.msra.mxu3 %v371_v26 }
  0x37   : > { %322 = vperm.xlu0 %656, %v284_v25  }
  0x38   : > { %454 = vperm.xlu1 %657, %v424_v30   ;;  %459 = vperm.xlu2 %658, %v425_v48  }
  0x3c   : > { %386 = vmatpush.bf16.xpose.msra.mxu0 %v368_v32  ;;  %604 = vmatpush.bf16.xpose.msra.mxu1 %v368_v32 }
  0x3d   : > { %605 = vmatpush.bf16.xpose.msra.mxu2 %v368_v32  ;;  %606 = vmatpush.bf16.xpose.msra.mxu3 %v368_v32 }
  0x3f   : > { %464 = vperm.xlu0 %656, %v426_v31  }
  0x44   : > { %387 = vmatpush.bf16.xpose.msra.mxu0 %v365_v37  ;;  %607 = vmatpush.bf16.xpose.msra.mxu1 %v365_v37 }
  0x45   : > { %608 = vmatpush.bf16.xpose.msra.mxu2 %v365_v37  ;;  %609 = vmatpush.bf16.xpose.msra.mxu3 %v365_v37 }
  0x4c   : > { %388 = vmatpush.bf16.xpose.msra.mxu0 %v362_v42  ;;  %610 = vmatpush.bf16.xpose.msra.mxu1 %v362_v42 }
  0x4d   : > { %611 = vmatpush.bf16.xpose.msra.mxu2 %v362_v42  ;;  %612 = vmatpush.bf16.xpose.msra.mxu3 %v362_v42 }
  0x54   : > { %389 = vmatpush.bf16.xpose.msra.mxu0 %v359_v47  ;;  %613 = vmatpush.bf16.xpose.msra.mxu1 %v359_v47 }
  0x55   : > { %614 = vmatpush.bf16.xpose.msra.mxu2 %v359_v47  ;;  %615 = vmatpush.bf16.xpose.msra.mxu3 %v359_v47 }
  0x5b   : > { %582 = vmatmul.msk.bf16.vlgmr.msra.gmra.mxu0 %vm345_vm0, %v588_v49  ;;  %583 = vmatmul.msk.bf16.vlgmr.msra.gmra.mxu1 %vm345_vm0, %v589_v50  ;;  %v489_v49 = vstv %s488_s18 }
  0x5c   : > { %584 = vmatmul.msk.bf16.vlgmr.msra.gmra.mxu2 %vm345_vm0, %v590_v51  ;;  %585 = vmatmul.msk.bf16.vlgmr.msra.gmra.mxu3 %vm345_vm0, %v591_v52 }
  0x72   : > { %v308_v55 = vpop.permute.xlu2 %307 }
  0x7a   : > { %v430_v58 = vpop.permute.xlu2 %429 }
  0x82   : > { %v313_v63 = vpop.permute.xlu2 %312 }
  0x89   : > { %v288_v53 = vpop.permute.xlu0 %287 }
  0x8a   : > { %v298_v54 = vpop.permute.xlu1 %297  ;;  %v450_v14 = vpop.permute.xlu2 %449 }
  0x91   : > { %v293_v56 = vpop.permute.xlu0 %292 }
  0x92   : > { %v303_v57 = vpop.permute.xlu1 %302  ;;  %v460_v37 = vpop.permute.xlu2 %459 }
  0x99   : > { %v435_v59 = vpop.permute.xlu0 %434 }
  0x9a   : > { %v440_v60 = vpop.permute.xlu1 %439 }
  0xa1   : > { %v445_v0 = vpop.permute.xlu0 %444 }
  0xa2   : > { %v318_v10 = vpop.permute.xlu1 %317 }
  0xa9   : > { %v323_v18 = vpop.permute.xlu0 %322 }
  0xaa   : > { %v455_v33 = vpop.permute.xlu1 %454 }
  0xb1   : > { %v465_v40 = vpop.permute.xlu0 %464 }
  0xd8   : > { %v391_v61 = vpop.f32.mrf.mxu0  ;;  %v396_v62 = vpop.f32.mrf.mxu1 }
  0xd9   : > { %v392_v1 = vadd.f32 %v391_v61, %v288_v53  ;;  %v397_v2 = vadd.f32 %v396_v62, %v298_v54 }
  0xdb   : > { %v411_v7 = vmax.f32 %v392_v1, 0.0  ;;  %v413_v11 = vmax.f32 %v397_v2, 0.0 }
  0xdd   : > { %v467_v15 = vmul.f32 %v430_v58, %v411_v7  ;;  %v469_v19 = vmul.f32 %v440_v60, %v413_v11 }
  0xdf   : > { %v401_v3 = vpop.f32.mrf.mxu2  ;;  %v406_v4 = vpop.f32.mrf.mxu3 }
  0xe0   : > { %v393_v5 = vpop.f32.mrf.mxu0  ;;  %v398_v6 = vpop.f32.mrf.mxu1  ;;  %v402_v12 = vadd.f32 %v401_v3, %v308_v55  ;;  %v407_v21 = vadd.f32 %v406_v4, %v318_v10 }
  0xe1   : > { %v394_v8 = vadd.f32 %v393_v5, %v293_v56  ;;  %v399_v9 = vadd.f32 %v398_v6, %v303_v57 }
  0xe2   : > { %v415_v20 = vmax.f32 %v402_v12, 0.0  ;;  %v417_v31 = vmax.f32 %v407_v21, 0.0 }
  0xe3   : > { %v412_v13 = vmax.f32 %v394_v8, 0.0  ;;  %v414_v17 = vmax.f32 %v399_v9, 0.0 }
  0xe4   : > { %v471_v30 = vmul.f32 %v450_v14, %v415_v20  ;;  %v473_v38 = vmul.f32 %v460_v37, %v417_v31 }
  0xe5   : > { %v468_v16 = vmul.f32 %v435_v59, %v412_v13  ;;  %v470_v26 = vmul.f32 %v445_v0, %v414_v17 }
  0xe7   : > { %v475_v22 = vadd.f32 %v468_v16, %v467_v15  ;;  %v403_v23 = vpop.f32.mrf.mxu2  ;;  %v408_v24 = vpop.f32.mrf.mxu3 }
  0xe8   : > { %v404_v25 = vadd.f32 %v403_v23, %v313_v63  ;;  %v409_v28 = vadd.f32 %v408_v24, %v323_v18 }
  0xe9   : > { %v476_v27 = vadd.f32 %v475_v22, %v469_v19 }
  0xea   : > { %v416_v29 = vmax.f32 %v404_v25, 0.0  ;;  %v418_v36 = vmax.f32 %v409_v28, 0.0 }
  0xeb   : > { %v477_v32 = vadd.f32 %v476_v27, %v470_v26 }
  0xec   : > { %v472_v34 = vmul.f32 %v455_v33, %v416_v29  ;;  %v474_v41 = vmul.f32 %v465_v40, %v418_v36 }
  0xed   : > { %v478_v35 = vadd.f32 %v477_v32, %v471_v30 }
  0xef   : > { %v479_v39 = vadd.f32 %v478_v35, %v472_v34 }
  0xf1   : > { %v480_v42 = vadd.f32 %v479_v39, %v473_v38 }
  0xf3   : > { %v481_v43 = vadd.f32 %v480_v42, %v474_v41 }
  0xf5   : > { %v482_v44 = vrot.slane %v481_v43, 4 }
  0xf7   : > { %v483_v45 = vadd.f32 %v482_v44, %v481_v43 }
  0xf9   : > { %v484_v46 = vrot.slane %v483_v45, 2 }
  0xfb   : > { %v485_v47 = vadd.f32 %v484_v46, %v483_v45 }
  0xfd   : > { %v486_v48 = vrot.slane %v485_v47, 1 }
  0xff   : > { %v487_v50 = vadd.f32 %v486_v48, %v485_v47 }
 0x101   : > { %v490_v51 = vadd.f32 %v489_v49, %v487_v50 }
 0x103   : > { %491 = vst [vmem:[%s230_s6] sm:$0x1] %v490_v51 }
 0x104   : > { %686 = shalt.err (!%p683_p3)
}
 0x105   : > { %616 = dma.vmem_to_hbm [thread:$0]  (%p795_p5), %s504_s7, 16, %s506_s8, %s493_s9  }
 0x106 PF: > { %p622_p4 = scmp.ge.s32.totalorder %s721_s23, 2  ;;  %s517_s16 = sand.u32 1, %s709_s20  }
 0x107   : > { %s518_s17 = scalar_lea.sflag [#allocation4], %s517_s16 }
 0x108   : > { %p619_p7 = pnand %p622_p4, %p799_p6 }
 0x10a   : > { %p620_p8 = pneg %p619_p7 }
 0x10c   : > { %704 = dma.done.wait (%p620_p8), %s518_s17, 16  }
 0x10d   : > { %706 = vsyncadd (%p620_p8), %s518_s17, 4294967280  ;;  %p16_p9 = scmp.ge.s32.totalorder %s782_s25, 4   ;;  %s939_s20 = smov %s713_s21 }
 0x10e   : > { %s940_s21 = smov %s717_s22  ;;  %s941_s22 = smov %s793_s28 }
 0x10f   : > { %s942_s23 = smov %s782_s25  ;;  %18 = sbr.rel (!%p16_p9) target bundleno = 5 (0x5), region = 75 }
 0x114   :  { %523 = vsyncpa [#allocation4], 1 }
 0x115   :  { %525 = vsyncpa [#allocation4 + $0x1], 1 }

</bundles_post_ra>
